<compile_context>
chip_gen: v7x
topology: tpu7x:2x2x1
jax: 0.10.0
libtpu: 0.0.40
codegen_flags: <defaults>
</compile_context>

<pallas_src>
import jax
import jax.numpy as jnp
from jax.experimental import pallas as pl
from jax.experimental.pallas import tpu as pltpu

MAX_SENTENCE_LENGTH = 50       # kept for parity with the module, unused in fwd
NUM_ELMO_LAYERS = 2
ELMO_DIM = 1024
NUM_CLASS = 8

D = ELMO_DIM * NUM_ELMO_LAYERS   # 2048
C_PAD = 128                      # lane-dense class axis
NEG_BIG = -1e30                  # bias padding: exp(NEG_BIG - m) == 0


def _round_up(x, m):
    return (x + m - 1) // m * m


def net_kernel(x_ref, w_ref, b_ref, o_ref):
    # x_ref: (TB, D) f32 (streamed)  w_ref: (D, C_PAD) bf16 (resident)
    # b_ref: (1, C_PAD) f32 (resident)  o_ref: (TB, C_PAD) bf16
    # Cast X to bf16 in-register right before the MXU so X crosses HBM exactly
    # once at 4 B/elem (no separate wrapper cast pass).
    x_bf = x_ref[...].astype(jnp.bfloat16)
    logits = jnp.dot(x_bf, w_ref[...], preferred_element_type=jnp.float32)
    logits = logits + b_ref[...]          # f32 add keeps NEG_BIG padding exact
    # numerically-stable softmax along the (padded) class axis
    m = jnp.max(logits, axis=-1, keepdims=True)
    e = jnp.exp(logits - m)
    denom = jnp.sum(e, axis=-1, keepdims=True)
    o_ref[...] = (e * pl.reciprocal(denom, approx=True)).astype(o_ref.dtype)


def prepare_params(weight, bias):
    """One-time prep of torch-style weight (num_class, D) / bias (num_class,)
    into kernel layout. Hoisted out of the per-call path."""
    w_pad = jnp.pad(weight.T.astype(jnp.bfloat16),
                    ((0, 0), (0, C_PAD - NUM_CLASS)))          # (D, C_PAD) bf16
    b_pad = jnp.pad(bias.astype(jnp.float32), (0, C_PAD - NUM_CLASS),
                    constant_values=NEG_BIG).reshape(1, C_PAD)  # (1, C_PAD) f32
    return w_pad, b_pad


def net_forward(inputs, w_pad, b_pad, *, tile_b=512):
    """inputs: (B, num_Elmo_layers, 1024) f32; w_pad/b_pad from prepare_params.
    Returns softmax probabilities (B, num_class) f32."""
    B = inputs.shape[0]
    x = inputs.reshape(B, D)            # flatten only; X stays f32, no pad/copy

    if B <= 16:
        # Single block equal to the full array dims (allowed by the (8,128)
        # rule) -> no batch padding needed for tiny B.
        tile_b = B
    else:
        # >= 2 grid steps so v7x megacore can shard the batch over both TCs;
        # 16-row alignment keeps the bf16 output block sublane-packed.
        tile_b = min(tile_b, _round_up(-(-B // 2), 16))
    grid = (pl.cdiv(B, tile_b),)        # partial last block: OOB rows isolated
                                        # on read, dropped on write

    out = pl.pallas_call(
        net_kernel,
        out_shape=jax.ShapeDtypeStruct((B, C_PAD), jnp.bfloat16),
        grid=grid,
        in_specs=[
            pl.BlockSpec((tile_b, D), lambda i: (i, 0)),    # streamed X (f32)
            pl.BlockSpec((D, C_PAD), lambda i: (0, 0)),     # resident W (bf16)
            pl.BlockSpec((1, C_PAD), lambda i: (0, 0)),     # resident bias (f32)
        ],
        out_specs=pl.BlockSpec((tile_b, C_PAD), lambda i: (i, 0)),
        compiler_params=pltpu.CompilerParams(
            dimension_semantics=("parallel",),
            # f32 X at tile_b=512 double-buffered ~8 MiB + W/out buffers;
            # 32 MiB is safe on v5e/v6e (128 MiB) and v7x (64 MiB) and avoids
            # the v5e 16 MiB default-scoped-limit squeeze.
            vmem_limit_bytes=32 * 1024 * 1024,
        ),
        cost_estimate=pl.CostEstimate(
            flops=2 * B * D * NUM_CLASS,               # real classes only
            transcendentals=B * NUM_CLASS,
            bytes_accessed=(B * D * 4                  # X f32 (dominant)
                            + D * C_PAD * 2            # W bf16
                            + C_PAD * 4                # bias f32
                            + B * C_PAD * 2),          # out bf16
        ),
    )(x, w_pad, b_pad)

    # Drop phantom classes; casting the tiny (B, 8) slab back to f32 is
    # negligible and preserves the module's output dtype.
    return out[:, :NUM_CLASS].astype(jnp.float32)


if __name__ == "__main__":
    key = jax.random.PRNGKey(0)
    k_in, k_w, k_b = jax.random.split(key, 3)

    batch = 2

    # deterministic synthetic parameters (torch Linear shapes: (out, in), (out,))
    weight = jax.random.normal(k_w, (NUM_CLASS, D), dtype=jnp.float32) * 0.02
    bias = jax.random.normal(k_b, (NUM_CLASS,), dtype=jnp.float32) * 0.02

    inputs = jax.random.normal(
        k_in, (batch, NUM_ELMO_LAYERS, ELMO_DIM), dtype=jnp.float32
    )

    w_pad, b_pad = prepare_params(weight, bias)   # hoisted, one-time prep
    out = net_forward(inputs, w_pad, b_pad)
    out = jax.block_until_ready(out)

    # correctness: compare against pure-JAX f32 reference (bf16 MXU + bf16
    # output -> loose tolerance)
    ref = jax.nn.softmax(
        inputs.reshape(batch, D) @ weight.T + bias[None, :], axis=-1
    )
    assert out.shape == (batch, NUM_CLASS)
    assert bool(jnp.all(jnp.abs(jnp.sum(out, axis=-1) - 1.0) < 1e-2))
    assert bool(jnp.all(jnp.abs(out - ref) < 2e-2))

    print("KERNEL_OK")
</pallas_src>

<mosaic_0001>
module attributes {stable_mosaic.version = 11 : i64} {
  func.func @net_kernel(%arg0: i32, %arg1: memref<2x2048xf32, #tpu.memory_space<vmem>>, %arg2: memref<2048x128xbf16, #tpu.memory_space<vmem>>, %arg3: memref<1x128xf32, #tpu.memory_space<vmem>>, %arg4: memref<2x128xbf16, #tpu.memory_space<vmem>>) attributes {dimension_semantics = [#tpu.dimension_semantics<parallel>], iteration_bounds = array<i64: 1>, scalar_prefetch = 0 : i64, scratch_operands = 0 : i64, tpu.core_type = #tpu.core_type<tc>, window_params = [{transform_indices = @transform_0, window_bounds = array<i64: 2, 2048>}, {pipeline_mode = #tpu.pipeline_mode<synchronous>, transform_indices = @transform_1, window_bounds = array<i64: 2048, 128>}, {pipeline_mode = #tpu.pipeline_mode<synchronous>, transform_indices = @transform_2, window_bounds = array<i64: 1, 128>}, {transform_indices = @transform_3, window_bounds = array<i64: 2, 128>}]} {
    %c0 = arith.constant 0 : index
    %c0_0 = arith.constant 0 : index
    %0 = vector.load %arg1[%c0, %c0_0] : memref<2x2048xf32, #tpu.memory_space<vmem>>, vector<2x2048xf32>
    %1 = arith.truncf %0 : vector<2x2048xf32> to vector<2x2048xbf16>
    %c0_1 = arith.constant 0 : index
    %c0_2 = arith.constant 0 : index
    %2 = vector.load %arg2[%c0_1, %c0_2] : memref<2048x128xbf16, #tpu.memory_space<vmem>>, vector<2048x128xbf16>
    %cst = arith.constant dense<0.000000e+00> : vector<2x128xf32>
    %3 = tpu.matmul %1, %2, %cst {dimension_numbers = #tpu.dot_dimension_numbers<[1], [0], [0], [1], [0, 0, 1, 1], [], []>} : vector<2x2048xbf16>, vector<2048x128xbf16>, vector<2x128xf32> -> vector<2x128xf32>
    %c0_3 = arith.constant 0 : index
    %c0_4 = arith.constant 0 : index
    %4 = vector.load %arg3[%c0_3, %c0_4] : memref<1x128xf32, #tpu.memory_space<vmem>>, vector<1x128xf32>
    %5 = vector.broadcast %4 : vector<1x128xf32> to vector<2x128xf32>
    %6 = arith.addf %3, %5 : vector<2x128xf32>
    %cst_5 = arith.constant dense<0xFF800000> : vector<2xf32>
    %7 = vector.multi_reduction <maximumf>, %6, %cst_5 [1] : vector<2x128xf32> to vector<2xf32>
    %8 = vector.shape_cast %7 : vector<2xf32> to vector<2x1xf32>
    %9 = vector.broadcast %8 : vector<2x1xf32> to vector<2x128xf32>
    %10 = arith.subf %6, %9 : vector<2x128xf32>
    %11 = math.exp %10 : vector<2x128xf32>
    %cst_6 = arith.constant dense<0.000000e+00> : vector<2xf32>
    %12 = vector.multi_reduction <add>, %11, %cst_6 [1] : vector<2x128xf32> to vector<2xf32>
    %13 = vector.shape_cast %12 : vector<2xf32> to vector<2x1xf32>
    %14 = tpu.reciprocal %13 {approx = true} : vector<2x1xf32> -> vector<2x1xf32>
    %15 = vector.broadcast %14 : vector<2x1xf32> to vector<2x128xf32>
    %16 = arith.mulf %11, %15 : vector<2x128xf32>
    %17 = arith.truncf %16 : vector<2x128xf32> to vector<2x128xbf16>
    %c0_7 = arith.constant 0 : index
    %c0_8 = arith.constant 0 : index
    %18 = vector.load %arg4[%c0_7, %c0_8] : memref<2x128xbf16, #tpu.memory_space<vmem>>, vector<2x128xbf16>
    tpu.vector_store %arg4[%c0_7, %c0_8], %17 {strides = array<i32>} : memref<2x128xbf16, #tpu.memory_space<vmem>>, vector<2x128xbf16>,
    return
  }
  func.func @transform_0(%arg0: i32) -> (i32, i32) {
    %c0_i32 = arith.constant 0 : i32
    %c0_i32_0 = arith.constant 0 : i32
    return %arg0, %c0_i32 : i32, i32
  }
  func.func @transform_1(%arg0: i32) -> (i32, i32) {
    %c0_i32 = arith.constant 0 : i32
    %c0_i32_0 = arith.constant 0 : i32
    %c0_i32_1 = arith.constant 0 : i32
    return %c0_i32, %c0_i32_0 : i32, i32
  }
  func.func @transform_2(%arg0: i32) -> (i32, i32) {
    %c0_i32 = arith.constant 0 : i32
    %c0_i32_0 = arith.constant 0 : i32
    %c0_i32_1 = arith.constant 0 : i32
    return %c0_i32, %c0_i32_0 : i32, i32
  }
  func.func @transform_3(%arg0: i32) -> (i32, i32) {
    %c0_i32 = arith.constant 0 : i32
    %c0_i32_0 = arith.constant 0 : i32
    return %arg0, %c0_i32 : i32, i32
  }
}

</mosaic_0001>

<bundles_post_ra>
// kernel: tpu_custom_call.1
= control target key start
LH: loop header
LB: loop body
LE: loop exit
PB: predicated region body
PF: predicated region fallthrough
CT: control target
= control target key end

     0   :  { %8 = vsyncpa [#allocation3], 0  ;;  %s2132_s0 = inlined_call_operand.hbm [shape: f32[2,2048], index: 0, kind: input, shape index: {}]   ;;  %s2133_s1 = inlined_call_operand.hbm [shape: bf16[2048,128], index: 1, kind: input, shape index: {}]   ;;  %s2134_s2 = inlined_call_operand.vmem [shape: f32[1,128], index: 2, kind: input, shape index: {}]   ;;  %s2135_s3 = inlined_call_operand.hbm [shape: bf16[2,128], index: 3, kind: output, shape index: {}]  }
   0x1   :  { %9 = vsyncpa [#allocation6], 0 }
   0x2   :  { %10 = vsyncpa [#allocation4], 0  ;;  %s2050_s12 = smov [#allocation2]   ;;  %s2051_s14 = smov [#allocation5]  }
   0x3   :  { %s17_s13 = sshll.u32 %s2050_s12, 4  ;;  %s26_s15 = sshll.u32 %s2051_s14, 4  ;;  %s18_s13 = int_to_ptr.vmem [resolvable:$true] %s17_s13  ;;  %s2076_s15 = int_to_ptr.vmem [resolvable:$true] %s26_s15 }
   0x4   :  { %s1978_s18 = scalar_lea.hbm %s2132_s0, 512 }
   0x5   :  { %p1979_p0 = scmp.ne.s32.totalorder %s2132_s0, %s1978_s18  ;;  %p1982_p1 = scmp.lt.u32.totalorder %s1978_s18, %s2132_s0 }
   0x7   :  { %p1984_p2 = pnand %p1982_p1, %p1979_p0 }
   0x9   :  { %1987 = shalt.err (!%p1984_p2)
}
   0xa   :  { %s1988_s23 = scalar_lea.vmem %s18_s13, 512  ;;  %p1993_p4 = scmp.lt.s32.totalorder %s18_s13, %s18_s13 }
   0xb   :  { %p1989_p3 = scmp.ne.s32.totalorder %s18_s13, %s1988_s23  ;;  %p1994_p5 = scmp.lt.s32.totalorder %s1988_s23, %s1988_s23 }
   0xd   :  { %p1995_p6 = por %p1994_p5, %p1993_p4 }
   0xf   :  { %p1996_p7 = pnand %p1995_p6, %p1989_p3 }
  0x11   :  { %1999 = shalt.err (!%p1996_p7)
}
  0x12   :  { %20 = dma.hbm_to_vmem [thread:$0]  %s2132_s0, 512, %s18_s13, [#allocation3]  }
  0x13   :  { %s2000_s28 = scalar_lea.hbm %s2133_s1, 16384 }
  0x14   :  { %p2001_p8 = scmp.ne.s32.totalorder %s2133_s1, %s2000_s28  ;;  %p2004_p9 = scmp.lt.u32.totalorder %s2000_s28, %s2133_s1 }
  0x16   :  { %p2006_p10 = pnand %p2004_p9, %p2001_p8 }
  0x18   :  { %2009 = shalt.err (!%p2006_p10)
}
  0x19   :  { %s2010_s6 = scalar_lea.vmem %s2076_s15, 16384  ;;  %p2015_p12 = scmp.lt.s32.totalorder %s2076_s15, %s2076_s15 }
  0x1a   :  { %p2011_p11 = scmp.ne.s32.totalorder %s2076_s15, %s2010_s6  ;;  %p2016_p13 = scmp.lt.s32.totalorder %s2010_s6, %s2010_s6 }
  0x1c   :  { %p2017_p0 = por %p2016_p13, %p2015_p12 }
  0x1e   :  { %p2018_p1 = pnand %p2017_p0, %p2011_p11 }
  0x20   :  { %2021 = shalt.err (!%p2018_p1)
}
  0x21   :  { %s2052_s0 = smov 64   ;;  %s2053_s7 = smov 4  }
  0x22   :  { %32 = dma.hbm_to_vmem [thread:$0]  %s2133_s1, 16384, %s2076_s15, [#allocation6], %s2052_s0, %s2052_s0, %s2053_s7  }
  0x23   :  { %2044 = dma.done.wait [#allocation3], 512  }
  0x24   :  { %2045 = vsyncadd [#allocation3], 4294966784 }
  0x25   :  { %2046 = dma.done.wait [#allocation6], 16384  }
  0x26   :  { %2047 = vsyncadd [#allocation6], 4294950912  ;;  %v1842_v0 = vld [vmem:[#allocation5 + $0x40] sm:$0xff]   ;;  %v1846_v4 = vld [vmem:[#allocation5 + $0x48] sm:$0xff]   ;;  %v2054_v22 = vmov 1983009808   ;;  %v54_v24 = vlaneseq }
  0x27   :  { %v1843_v1 = vld [vmem:[#allocation5 + $0xc0] sm:$0xff]   ;;  %1660 = vmatprep.subr.bf16.mxu0 %v1842_v0  ;;  %v1847_v5 = vld [vmem:[#allocation5 + $0xc8] sm:$0xff]   ;;  %v1850_v8 = vld [vmem:[#allocation5 + $0x50] sm:$0xff]   ;;  %v52_v23 = vunpack.c.l.s4 %v2054_v22  ;;  %vm1501_vm0 = vcmask 1041408  }
  0x28   :  { %v1844_v2 = vld [vmem:[#allocation5] sm:$0xff]   ;;  %1682 = vmatprep.subr.bf16.mxu1 %v1843_v1  ;;  %v1848_v6 = vld [vmem:[#allocation5 + $0x8] sm:$0xff]   ;;  %v1851_v9 = vld [vmem:[#allocation5 + $0xd0] sm:$0xff]   ;;  %v55_v30 = vshrl.u32 %v54_v24, 7 }
  0x29   :  { %v1845_v3 = vld [vmem:[#allocation5 + $0x80] sm:$0xff]   ;;  %1661 = vmatpush3.bf16.msra.mxu0 %v1844_v2  ;;  %v1849_v7 = vld [vmem:[#allocation5 + $0x88] sm:$0xff]   ;;  %v1852_v10 = vld [vmem:[#allocation5 + $0x10] sm:$0xff]   ;;  %v53_v29 = vunpack.c.0.s8 %v52_v23 }
  0x2a   :  { %1683 = vmatpush3.bf16.msra.mxu1 %v1845_v3  ;;  %1662 = vmatprep.subr.bf16.mxu0 %v1846_v4  ;;  %v1853_v11 = vld [vmem:[#allocation5 + $0x90] sm:$0xff]   ;;  %v1854_v12 = vld [vmem:[#allocation5 + $0x58] sm:$0xff]   ;;  %v1858_v16 = vld [vmem:[#allocation5 + $0x60] sm:$0xff]  }
  0x2b   :  { %1684 = vmatprep.subr.bf16.mxu1 %v1847_v5  ;;  %v1855_v13 = vld [vmem:[#allocation5 + $0xd8] sm:$0xff]   ;;  %v1859_v17 = vld [vmem:[#allocation5 + $0xe0] sm:$0xff]   ;;  %v1862_v20 = vld [vmem:[#allocation5 + $0x68] sm:$0xff]   ;;  %v2107_v35 = vsub.s32 %v53_v29, %v55_v30 }
  0x2c   :  { %v1856_v14 = vld [vmem:[#allocation5 + $0x18] sm:$0xff]   ;;  %v1860_v18 = vld [vmem:[#allocation5 + $0x20] sm:$0xff]   ;;  %v1863_v21 = vld [vmem:[#allocation5 + $0xe8] sm:$0xff]  }
  0x2d   :  { %1663 = vmatpush3.bf16.msra.mxu0 %v1848_v6  ;;  %v1857_v15 = vld [vmem:[#allocation5 + $0x98] sm:$0xff]   ;;  %v1861_v19 = vld [vmem:[#allocation5 + $0xa0] sm:$0xff]   ;;  %v1864_v25 = vld [vmem:[#allocation5 + $0x28] sm:$0xff]  }
  0x2e   :  { %1685 = vmatpush3.bf16.msra.mxu1 %v1849_v7  ;;  %1664 = vmatprep.subr.bf16.mxu0 %v1850_v8  ;;  %v1865_v26 = vld [vmem:[#allocation5 + $0xa8] sm:$0xff]   ;;  %v1866_v27 = vld [vmem:[#allocation5 + $0x70] sm:$0xff]   ;;  %v1870_v33 = vld [vmem:[#allocation5 + $0x78] sm:$0xff]  }
  0x2f   :  { %1686 = vmatprep.subr.bf16.mxu1 %v1851_v9  ;;  %v1867_v28 = vld [vmem:[#allocation5 + $0xf0] sm:$0xff]   ;;  %v1871_v34 = vld [vmem:[#allocation5 + $0xf8] sm:$0xff]   ;;  %v42_v38 = vld [vmem:[#allocation2] sm:$0xff] }
  0x30   :  { %v1868_v31 = vld [vmem:[#allocation5 + $0x30] sm:$0xff]   ;;  %v1872_v36 = vld [vmem:[#allocation5 + $0x38] sm:$0xff]   ;;  %v57_v39 = vrot.slane %v42_v38, %v2107_v35  ;;  %v50_v40 = vcombine.high %v42_v38, %v42_v38  ;;  %v1875_v41 = vld [vmem:[#allocation5 + $0x140] sm:$0xff]  }
  0x31   :  { %1665 = vmatpush3.bf16.msra.mxu0 %v1852_v10  ;;  %v1869_v32 = vld [vmem:[#allocation5 + $0xb0] sm:$0xff]   ;;  %v1873_v37 = vld [vmem:[#allocation5 + $0xb8] sm:$0xff]   ;;  %v1876_v42 = vld [vmem:[#allocation5 + $0x1c0] sm:$0xff]  }
  0x32   :  { %1687 = vmatpush3.bf16.msra.mxu1 %v1853_v11  ;;  %1666 = vmatprep.subr.bf16.mxu0 %v1854_v12  ;;  %v65_v43 = vcombine.high %v57_v39, %v57_v39  ;;  %v64_v44 = vrot.slane %v50_v40, %v2107_v35  ;;  %v134_v45 = vpack.c.bf16 %v57_v39, %v57_v39  ;;  %v1877_v48 = vld [vmem:[#allocation5 + $0x100] sm:$0xff]   ;;  %v1879_v50 = vld [vmem:[#allocation5 + $0x148] sm:$0xff]   ;;  %v1883_v55 = vld [vmem:[#allocation5 + $0x150] sm:$0xff]  }
  0x33   :  { %1688 = vmatprep.subr.bf16.mxu1 %v1855_v13  ;;  %v1878_v52 = vld [vmem:[#allocation5 + $0x180] sm:$0xff]   ;;  %v1880_v53 = vld [vmem:[#allocation5 + $0x1c8] sm:$0xff]   ;;  %v1884_v57 = vld [vmem:[#allocation5 + $0x1d0] sm:$0xff]  }
  0x34   :  { %v135_v46 = vpack.c.bf16 %v65_v43, %v65_v43  ;;  %v66_v47 = vcombine.high %v64_v44, %v64_v44  ;;  %v136_v49 = vpack.c.bf16 %v64_v44, %v64_v44  ;;  %v1881_v54 = vld [vmem:[#allocation5 + $0x108] sm:$0xff]   ;;  %v1885_v58 = vld [vmem:[#allocation5 + $0x110] sm:$0xff]   ;;  %v1887_v59 = vld [vmem:[#allocation5 + $0x158] sm:$0xff]  }
  0x35   :  { %1667 = vmatpush3.bf16.msra.mxu0 %v1856_v14  ;;  %v1882_v56 = vld [vmem:[#allocation5 + $0x188] sm:$0xff]   ;;  %v1886_v60 = vld [vmem:[#allocation5 + $0x190] sm:$0xff]   ;;  %v1888_v61 = vld [vmem:[#allocation5 + $0x1d8] sm:$0xff]  }
  0x36   :  { %1689 = vmatpush3.bf16.msra.mxu1 %v1857_v15  ;;  %1668 = vmatprep.subr.bf16.mxu0 %v1858_v16  ;;  %v137_v51 = vpack.c.bf16 %v66_v47, %v66_v47  ;;  %v1889_v62 = vld [vmem:[#allocation5 + $0x118] sm:$0xff]   ;;  %v1891_v63 = vld [vmem:[#allocation5 + $0x160] sm:$0xff]   ;;  %v1895_v3 = vld [vmem:[#allocation5 + $0x168] sm:$0xff]  }
  0x37   :  { %1690 = vmatprep.subr.bf16.mxu1 %v1859_v17  ;;  %1213 = vmatprep.mubr.bf16.mxu0 %v135_v46  ;;  %v1890_v0 = vld [vmem:[#allocation5 + $0x198] sm:$0xff]   ;;  %v1892_v1 = vld [vmem:[#allocation5 + $0x1e0] sm:$0xff]   ;;  %v1896_v5 = vld [vmem:[#allocation5 + $0x1e8] sm:$0xff]  }
  0x38   :  { %1253 = vmatprep.mubr.bf16.mxu1 %v137_v51  ;;  %v1893_v2 = vld [vmem:[#allocation5 + $0x120] sm:$0xff]   ;;  %v1897_v6 = vld [vmem:[#allocation5 + $0x128] sm:$0xff]   ;;  %v1899_v7 = vld [vmem:[#allocation5 + $0x170] sm:$0xff]  }
  0x39   :  { %1669 = vmatpush3.bf16.msra.mxu0 %v1860_v18  ;;  %v1894_v4 = vld [vmem:[#allocation5 + $0x1a0] sm:$0xff]   ;;  %v1898_v8 = vld [vmem:[#allocation5 + $0x1a8] sm:$0xff]   ;;  %v1900_v9 = vld [vmem:[#allocation5 + $0x1f0] sm:$0xff]  }
  0x3a   :  { %1691 = vmatpush3.bf16.msra.mxu1 %v1861_v19  ;;  %1670 = vmatprep.subr.bf16.mxu0 %v1862_v20  ;;  %v1901_v10 = vld [vmem:[#allocation5 + $0x130] sm:$0xff]   ;;  %v1903_v11 = vld [vmem:[#allocation5 + $0x178] sm:$0xff]   ;;  %v43_v14 = vld [vmem:[#allocation2 + $0x8] sm:$0xff] }
  0x3b   :  { %1692 = vmatprep.subr.bf16.mxu1 %v1863_v21  ;;  %v1902_v12 = vld [vmem:[#allocation5 + $0x1b0] sm:$0xff]   ;;  %v1904_v13 = vld [vmem:[#allocation5 + $0x1f8] sm:$0xff]   ;;  %v74_v16 = vrot.slane %v43_v14, %v2107_v35  ;;  %v67_v17 = vcombine.high %v43_v14, %v43_v14  ;;  %v1908_v18 = vld [vmem:[#allocation5 + $0x240] sm:$0xff]  }
  0x3c   :  { %v1905_v15 = vld [vmem:[#allocation5 + $0x138] sm:$0xff]   ;;  %v1909_v23 = vld [vmem:[#allocation5 + $0x2c0] sm:$0xff]   ;;  %v1919_v39 = vld [vmem:[#allocation5 + $0x290] sm:$0xff]  }
  0x3d   :  { %1671 = vmatpush3.bf16.msra.mxu0 %v1864_v25  ;;  %v1906_v19 = vld [vmem:[#allocation5 + $0x1b8] sm:$0xff]   ;;  %v82_v20 = vcombine.high %v74_v16, %v74_v16  ;;  %v81_v21 = vrot.slane %v67_v17, %v2107_v35  ;;  %v138_v22 = vpack.c.bf16 %v74_v16, %v74_v16  ;;  %v1911_v30 = vld [vmem:[#allocation5 + $0x280] sm:$0xff]   ;;  %v1928_v46 = vld [vmem:[#allocation5 + $0x268] sm:$0xff]  }
  0x3e   :  { %1693 = vmatpush3.bf16.msra.mxu1 %v1865_v26  ;;  %1672 = vmatprep.subr.bf16.mxu0 %v1866_v27  ;;  %v1910_v26 = vld [vmem:[#allocation5 + $0x200] sm:$0xff]   ;;  %v1920_v38 = vld [vmem:[#allocation5 + $0x258] sm:$0xff]   ;;  %v1931_v51 = vld [vmem:[#allocation5 + $0x2a8] sm:$0xff]  }
  0x3f   :  { %1694 = vmatprep.subr.bf16.mxu1 %v1867_v28  ;;  %v139_v24 = vpack.c.bf16 %v82_v20, %v82_v20  ;;  %v83_v25 = vcombine.high %v81_v21, %v81_v21  ;;  %v140_v27 = vpack.c.bf16 %v81_v21, %v81_v21  ;;  %v1912_v28 = vld [vmem:[#allocation5 + $0x248] sm:$0xff]   ;;  %v1921_v40 = vld [vmem:[#allocation5 + $0x2d8] sm:$0xff]   ;;  %v1925_v44 = vld [vmem:[#allocation5 + $0x2e0] sm:$0xff]  }
  0x40   :  { %v1923_v43 = vld [vmem:[#allocation5 + $0x298] sm:$0xff]   ;;  %v1927_v47 = vld [vmem:[#allocation5 + $0x2a0] sm:$0xff]   ;;  %v1950_v14 = vld [vmem:[#allocation5 + $0x3d0] sm:$0xff]  }
  0x41   :  { %1673 = vmatpush3.bf16.msra.mxu0 %v1868_v31  ;;  %v141_v29 = vpack.c.bf16 %v83_v25, %v83_v25  ;;  %v1913_v31 = vld [vmem:[#allocation5 + $0x2c8] sm:$0xff]   ;;  %v1953_v16 = vld [vmem:[#allocation5 + $0x358] sm:$0xff]   ;;  %v1952_v17 = vld [vmem:[#allocation5 + $0x390] sm:$0xff]  }
  0x42   :  { %1695 = vmatpush3.bf16.msra.mxu1 %v1869_v32  ;;  %1674 = vmatprep.subr.bf16.mxu0 %v1870_v33  ;;  %v1914_v32 = vld [vmem:[#allocation5 + $0x208] sm:$0xff]   ;;  %v1916_v33 = vld [vmem:[#allocation5 + $0x250] sm:$0xff]   ;;  %v1957_v20 = vld [vmem:[#allocation5 + $0x360] sm:$0xff]  }
  0x43   :  { %1696 = vmatprep.subr.bf16.mxu1 %v1871_v34  ;;  %v1915_v34 = vld [vmem:[#allocation5 + $0x288] sm:$0xff]   ;;  %v1956_v21 = vld [vmem:[#allocation5 + $0x398] sm:$0xff]   ;;  %v1960_v25 = vld [vmem:[#allocation5 + $0x3a0] sm:$0xff]  }
  0x45   :  { %1675 = vmatpush3.bf16.msra.mxu0 %v1872_v36  ;;  %v1917_v36 = vld [vmem:[#allocation5 + $0x2d0] sm:$0xff]  }
  0x46   :  { %1697 = vmatpush3.bf16.msra.mxu1 %v1873_v37  ;;  %1704 = vmatprep.subr.bf16.mxu0 %v1875_v41  ;;  %v1918_v37 = vld [vmem:[#allocation5 + $0x210] sm:$0xff]   ;;  %v1922_v41 = vld [vmem:[#allocation5 + $0x218] sm:$0xff]  }
  0x47   :  { %1726 = vmatprep.subr.bf16.mxu1 %v1876_v42  ;;  %v1924_v42 = vld [vmem:[#allocation5 + $0x260] sm:$0xff]  }
  0x48   :  { %1214 = vmatmul.mubr.bf16.vlgmr.msra.gmra.mrb[0].mxu0 %v134_v45  ;;  %v1926_v45 = vld [vmem:[#allocation5 + $0x220] sm:$0xff]  }
  0x49   :  { %1705 = vmatpush3.bf16.msra.mxu0 %v1877_v48  ;;  %1254 = vmatmul.mubr.bf16.vlgmr.msra.gmra.mrb[0].mxu1 %v136_v49  ;;  %v1929_v48 = vld [vmem:[#allocation5 + $0x2e8] sm:$0xff]  }
  0x4a   :  { %1706 = vmatprep.subr.bf16.mxu0 %v1879_v50  ;;  %1727 = vmatpush3.bf16.msra.mxu1 %v1878_v52  ;;  %v1930_v49 = vld [vmem:[#allocation5 + $0x228] sm:$0xff]   ;;  %v1932_v50 = vld [vmem:[#allocation5 + $0x270] sm:$0xff]  }
  0x4b   :  { %1728 = vmatprep.subr.bf16.mxu1 %v1880_v53  ;;  %1293 = vmatprep.mubr.bf16.mxu0 %v139_v24  ;;  %v1933_v52 = vld [vmem:[#allocation5 + $0x2f0] sm:$0xff]   ;;  %v1961_v24 = vld [vmem:[#allocation5 + $0x368] sm:$0xff]  }
  0x4c   :  { %1333 = vmatprep.mubr.bf16.mxu1 %v141_v29  ;;  %v1934_v53 = vld [vmem:[#allocation5 + $0x230] sm:$0xff]   ;;  %v1964_v29 = vld [vmem:[#allocation5 + $0x3a8] sm:$0xff]  }
  0x4d   :  { %1707 = vmatpush3.bf16.msra.mxu0 %v1881_v54  ;;  %v1936_v54 = vld [vmem:[#allocation5 + $0x278] sm:$0xff]  }
  0x4e   :  { %1708 = vmatprep.subr.bf16.mxu0 %v1883_v55  ;;  %1729 = vmatpush3.bf16.msra.mxu1 %v1882_v56  ;;  %v1935_v55 = vld [vmem:[#allocation5 + $0x2b0] sm:$0xff]   ;;  %v1937_v56 = vld [vmem:[#allocation5 + $0x2f8] sm:$0xff]  }
  0x4f   :  { %1730 = vmatprep.subr.bf16.mxu1 %v1884_v57  ;;  %v44_v57 = vld [vmem:[#allocation2 + $0x10] sm:$0xff] }
  0x51   :  { %1709 = vmatpush3.bf16.msra.mxu0 %v1885_v58  ;;  %v1938_v58 = vld [vmem:[#allocation5 + $0x238] sm:$0xff]  }
  0x52   :  { %1710 = vmatprep.subr.bf16.mxu0 %v1887_v59  ;;  %1731 = vmatpush3.bf16.msra.mxu1 %v1886_v60  ;;  %v91_v59 = vrot.slane %v44_v57, %v2107_v35  ;;  %v84_v60 = vcombine.high %v44_v57, %v44_v57 }
  0x53   :  { %1732 = vmatprep.subr.bf16.mxu1 %v1888_v61  ;;  %v1941_v61 = vld [vmem:[#allocation5 + $0x340] sm:$0xff]  }
  0x55   :  { %1711 = vmatpush3.bf16.msra.mxu0 %v1889_v62  ;;  %v1939_v62 = vld [vmem:[#allocation5 + $0x2b8] sm:$0xff]  }
  0x56   :  { %1712 = vmatprep.subr.bf16.mxu0 %v1891_v63  ;;  %1733 = vmatpush3.bf16.msra.mxu1 %v1890_v0  ;;  %v99_v63 = vcombine.high %v91_v59, %v91_v59  ;;  %v98_v0 = vrot.slane %v84_v60, %v2107_v35 }
  0x57   :  { %1734 = vmatprep.subr.bf16.mxu1 %v1892_v1  ;;  %v142_v1 = vpack.c.bf16 %v91_v59, %v91_v59 }
  0x59   :  { %1713 = vmatpush3.bf16.msra.mxu0 %v1893_v2  ;;  %v1942_v2 = vld [vmem:[#allocation5 + $0x3c0] sm:$0xff]  }
  0x5a   :  { %1714 = vmatprep.subr.bf16.mxu0 %v1895_v3  ;;  %1735 = vmatpush3.bf16.msra.mxu1 %v1894_v4  ;;  %v143_v3 = vpack.c.bf16 %v99_v63, %v99_v63  ;;  %v100_v4 = vcombine.high %v98_v0, %v98_v0 }
  0x5b   :  { %1736 = vmatprep.subr.bf16.mxu1 %v1896_v5  ;;  %v1943_v5 = vld [vmem:[#allocation5 + $0x300] sm:$0xff]  }
  0x5d   :  { %1715 = vmatpush3.bf16.msra.mxu0 %v1897_v6  ;;  %v144_v6 = vpack.c.bf16 %v98_v0, %v98_v0 }
  0x5e   :  { %1716 = vmatprep.subr.bf16.mxu0 %v1899_v7  ;;  %1737 = vmatpush3.bf16.msra.mxu1 %v1898_v8  ;;  %v1945_v7 = vld [vmem:[#allocation5 + $0x348] sm:$0xff]   ;;  %v145_v8 = vpack.c.bf16 %v100_v4, %v100_v4 }
  0x5f   :  { %1738 = vmatprep.subr.bf16.mxu1 %v1900_v9  ;;  %v1944_v9 = vld [vmem:[#allocation5 + $0x380] sm:$0xff]  }
  0x61   :  { %1717 = vmatpush3.bf16.msra.mxu0 %v1901_v10  ;;  %v1946_v10 = vld [vmem:[#allocation5 + $0x3c8] sm:$0xff]  }
  0x62   :  { %1718 = vmatprep.subr.bf16.mxu0 %v1903_v11  ;;  %1739 = vmatpush3.bf16.msra.mxu1 %v1902_v12  ;;  %v1947_v11 = vld [vmem:[#allocation5 + $0x308] sm:$0xff]   ;;  %v1949_v12 = vld [vmem:[#allocation5 + $0x350] sm:$0xff]  }
  0x63   :  { %1740 = vmatprep.subr.bf16.mxu1 %v1904_v13  ;;  %v1948_v13 = vld [vmem:[#allocation5 + $0x388] sm:$0xff]  }
  0x65   :  { %1719 = vmatpush3.bf16.msra.mxu0 %v1905_v15  ;;  %v1951_v15 = vld [vmem:[#allocation5 + $0x310] sm:$0xff]  }
  0x66   :  { %1748 = vmatprep.subr.bf16.mxu0 %v1908_v18  ;;  %1741 = vmatpush3.bf16.msra.mxu1 %v1906_v19  ;;  %v1954_v18 = vld [vmem:[#allocation5 + $0x3d8] sm:$0xff]  }
  0x67   :  { %1770 = vmatprep.subr.bf16.mxu1 %v1909_v23  ;;  %v1955_v19 = vld [vmem:[#allocation5 + $0x318] sm:$0xff]   ;;  %v1959_v23 = vld [vmem:[#allocation5 + $0x320] sm:$0xff]  }
  0x68   :  { %1294 = vmatmul.mubr.bf16.vlgmr.msra.gmra.mrb[4].mxu0 %v138_v22  ;;  %v1958_v22 = vld [vmem:[#allocation5 + $0x3e0] sm:$0xff]  }
  0x69   :  { %1749 = vmatpush3.bf16.msra.mxu0 %v1910_v26  ;;  %1334 = vmatmul.mubr.bf16.vlgmr.msra.gmra.mrb[4].mxu1 %v140_v27  ;;  %v1962_v26 = vld [vmem:[#allocation5 + $0x3e8] sm:$0xff]  }
  0x6a   :  { %1750 = vmatprep.subr.bf16.mxu0 %v1912_v28  ;;  %1771 = vmatpush3.bf16.msra.mxu1 %v1911_v30  ;;  %v1963_v27 = vld [vmem:[#allocation5 + $0x328] sm:$0xff]   ;;  %v1965_v28 = vld [vmem:[#allocation5 + $0x370] sm:$0xff]  }
  0x6b   :  { %1772 = vmatprep.subr.bf16.mxu1 %v1913_v31  ;;  %1373 = vmatprep.mubr.bf16.mxu0 %v143_v3  ;;  %v1966_v30 = vld [vmem:[#allocation5 + $0x3f0] sm:$0xff]  }
  0x6c   :  { %1413 = vmatprep.mubr.bf16.mxu1 %v145_v8  ;;  %v1967_v31 = vld [vmem:[#allocation5 + $0x330] sm:$0xff]  }
  0x6d   :  { %1751 = vmatpush3.bf16.msra.mxu0 %v1914_v32  ;;  %v1969_v32 = vld [vmem:[#allocation5 + $0x378] sm:$0xff]  }
  0x6e   :  { %1752 = vmatprep.subr.bf16.mxu0 %v1916_v33  ;;  %1773 = vmatpush3.bf16.msra.mxu1 %v1915_v34  ;;  %v1968_v33 = vld [vmem:[#allocation5 + $0x3b0] sm:$0xff]   ;;  %v1970_v34 = vld [vmem:[#allocation5 + $0x3f8] sm:$0xff]  }
  0x6f   :  { %1774 = vmatprep.subr.bf16.mxu1 %v1917_v36  ;;  %v1971_v36 = vld [vmem:[#allocation5 + $0x338] sm:$0xff]  }
  0x71   :  { %1753 = vmatpush3.bf16.msra.mxu0 %v1918_v37  ;;  %v45_v37 = vld [vmem:[#allocation2 + $0x18] sm:$0xff] }
  0x72   :  { %1754 = vmatprep.subr.bf16.mxu0 %v1920_v38  ;;  %1775 = vmatpush3.bf16.msra.mxu1 %v1919_v39  ;;  %v108_v38 = vrot.slane %v45_v37, %v2107_v35  ;;  %v101_v39 = vcombine.high %v45_v37, %v45_v37 }
  0x73   :  { %1776 = vmatprep.subr.bf16.mxu1 %v1921_v40  ;;  %v1972_v40 = vld [vmem:[#allocation5 + $0x3b8] sm:$0xff]  }
  0x75   :  { %1755 = vmatpush3.bf16.msra.mxu0 %v1922_v41  ;;  %v116_v41 = vcombine.high %v108_v38, %v108_v38 }
  0x76   :  { %1756 = vmatprep.subr.bf16.mxu0 %v1924_v42  ;;  %1777 = vmatpush3.bf16.msra.mxu1 %v1923_v43  ;;  %v115_v42 = vrot.slane %v101_v39, %v2107_v35  ;;  %v146_v43 = vpack.c.bf16 %v108_v38, %v108_v38 }
  0x77   :  { %1778 = vmatprep.subr.bf16.mxu1 %v1925_v44  ;;  %v147_v44 = vpack.c.bf16 %v116_v41, %v116_v41 }
  0x79   :  { %1757 = vmatpush3.bf16.msra.mxu0 %v1926_v45  ;;  %v117_v45 = vcombine.high %v115_v42, %v115_v42 }
  0x7a   :  { %1758 = vmatprep.subr.bf16.mxu0 %v1928_v46  ;;  %1779 = vmatpush3.bf16.msra.mxu1 %v1927_v47  ;;  %v148_v46 = vpack.c.bf16 %v115_v42, %v115_v42 }
  0x7b   :  { %1780 = vmatprep.subr.bf16.mxu1 %v1929_v48  ;;  %v149_v47 = vpack.c.bf16 %v117_v45, %v117_v45 }
  0x7d   :  { %1759 = vmatpush3.bf16.msra.mxu0 %v1930_v49  ;;  %v1531_v49 = vld [vmem:[%s2134_s2] ss:$0 sm:$0xff]  ;;  %s2055_s2 = smov [#allocation7]  }
  0x7e   :  { %1760 = vmatprep.subr.bf16.mxu0 %v1932_v50  ;;  %1781 = vmatpush3.bf16.msra.mxu1 %v1931_v51  ;;  %s1521_s11 = sshll.u32 %s2055_s2, 4  ;;  %s1522_s11 = int_to_ptr.vmem [resolvable:$true] %s1521_s11 }
  0x7f   :  { %1782 = vmatprep.subr.bf16.mxu1 %v1933_v52  ;;  %s2022_s12 = scalar_lea.vmem %s1522_s11, 16  ;;  %s2026_s13 = scalar_lea.vmem %s1522_s11, 32 }
  0x80   :  { %p2023_p2 = scmp.ne.s32.totalorder %s1522_s11, %s2022_s12  ;;  %p2027_p3 = scmp.lt.s32.totalorder %s1522_s11, %s1522_s11 }
  0x81   :  { %1761 = vmatpush3.bf16.msra.mxu0 %v1934_v53  ;;  %p2028_p4 = scmp.lt.s32.totalorder %s2026_s13, %s2022_s12 }
  0x82   :  { %1762 = vmatprep.subr.bf16.mxu0 %v1936_v54  ;;  %1783 = vmatpush3.bf16.msra.mxu1 %v1935_v55 }
  0x83   :  { %1784 = vmatprep.subr.bf16.mxu1 %v1937_v56  ;;  %p2029_p5 = por %p2028_p4, %p2027_p3 }
  0x85   :  { %1763 = vmatpush3.bf16.msra.mxu0 %v1938_v58  ;;  %p2030_p6 = pnand %p2029_p5, %p2023_p2 }
  0x86   :  { %1792 = vmatprep.subr.bf16.mxu0 %v1941_v61  ;;  %1785 = vmatpush3.bf16.msra.mxu1 %v1939_v62 }
  0x87   :  { %1814 = vmatprep.subr.bf16.mxu1 %v1942_v2 }
  0x88   :  { %1374 = vmatmul.mubr.bf16.vlgmr.msra.gmra.mrb[8].mxu0 %v142_v1 }
  0x89   :  { %1793 = vmatpush3.bf16.msra.mxu0 %v1943_v5  ;;  %1414 = vmatmul.mubr.bf16.vlgmr.msra.gmra.mrb[8].mxu1 %v144_v6 }
  0x8a   :  { %1794 = vmatprep.subr.bf16.mxu0 %v1945_v7  ;;  %1815 = vmatpush3.bf16.msra.mxu1 %v1944_v9 }
  0x8b   :  { %1816 = vmatprep.subr.bf16.mxu1 %v1946_v10  ;;  %1453 = vmatprep.mubr.bf16.mxu0 %v147_v44 }
  0x8c   :  { %1493 = vmatprep.mubr.bf16.mxu1 %v149_v47 }
  0x8d   :  { %1795 = vmatpush3.bf16.msra.mxu0 %v1947_v11 }
  0x8e   :  { %1796 = vmatprep.subr.bf16.mxu0 %v1949_v12  ;;  %1817 = vmatpush3.bf16.msra.mxu1 %v1948_v13 }
  0x8f   :  { %1818 = vmatprep.subr.bf16.mxu1 %v1950_v14 }
  0x91   :  { %1797 = vmatpush3.bf16.msra.mxu0 %v1951_v15 }
  0x92   :  { %1798 = vmatprep.subr.bf16.mxu0 %v1953_v16  ;;  %1819 = vmatpush3.bf16.msra.mxu1 %v1952_v17 }
  0x93   :  { %1820 = vmatprep.subr.bf16.mxu1 %v1954_v18 }
  0x95   :  { %1799 = vmatpush3.bf16.msra.mxu0 %v1955_v19 }
  0x96   :  { %1800 = vmatprep.subr.bf16.mxu0 %v1957_v20  ;;  %1821 = vmatpush3.bf16.msra.mxu1 %v1956_v21 }
  0x97   :  { %1822 = vmatprep.subr.bf16.mxu1 %v1958_v22 }
  0x99   :  { %1801 = vmatpush3.bf16.msra.mxu0 %v1959_v23 }
  0x9a   :  { %1802 = vmatprep.subr.bf16.mxu0 %v1961_v24  ;;  %1823 = vmatpush3.bf16.msra.mxu1 %v1960_v25 }
  0x9b   :  { %1824 = vmatprep.subr.bf16.mxu1 %v1962_v26 }
  0x9d   :  { %1803 = vmatpush3.bf16.msra.mxu0 %v1963_v27 }
  0x9e   :  { %1804 = vmatprep.subr.bf16.mxu0 %v1965_v28  ;;  %1825 = vmatpush3.bf16.msra.mxu1 %v1964_v29 }
  0x9f   :  { %1826 = vmatprep.subr.bf16.mxu1 %v1966_v30 }
  0xa1   :  { %1805 = vmatpush3.bf16.msra.mxu0 %v1967_v31 }
  0xa2   :  { %1806 = vmatprep.subr.bf16.mxu0 %v1969_v32  ;;  %1827 = vmatpush3.bf16.msra.mxu1 %v1968_v33 }
  0xa3   :  { %1828 = vmatprep.subr.bf16.mxu1 %v1970_v34 }
  0xa5   :  { %1807 = vmatpush3.bf16.msra.mxu0 %v1971_v36 }
  0xa6   :  { %1829 = vmatpush3.bf16.msra.mxu1 %v1972_v40 }
  0xa8   :  { %1454 = vmatmul.mubr.bf16.vlgmr.msra.gmra.mrb[12].mxu0 %v146_v43 }
  0xa9   :  { %1494 = vmatmul.mubr.bf16.vlgmr.msra.gmra.mrb[12].mxu1 %v148_v46 }
 0x11b   :  { %v1676_v48 = vpop.f32.mrb[0].mxu0 }
 0x11c   :  { %v1677_v50 = vpop.f32.mrb[1].mxu0  ;;  %v1698_v51 = vpop.f32.mrb[0].mxu1 }
 0x11d   :  { %v1678_v52 = vadd.f32 %v1677_v50, %v1676_v48  ;;  %v1679_v35 = vpop.f32.mrb[2].mxu0  ;;  %v1699_v53 = vpop.f32.mrb[1].mxu1 }
 0x11e   :  { %v1680_v54 = vpop.f32.mrb[3].mxu0  ;;  %v1700_v56 = vadd.f32 %v1699_v53, %v1698_v51  ;;  %v1701_v57 = vpop.f32.mrb[2].mxu1 }
 0x11f   :  { %v1216_v55 = vadd.f32 %v1678_v52, %v1531_v49  ;;  %v1702_v58 = vpop.f32.mrb[3].mxu1 }
 0x121   :  { %v1256_v59 = vadd.f32 %v1700_v56, %v1216_v55 }
 0x13b   :  { %v1720_v60 = vpop.f32.mrb[4].mxu0 }
 0x13c   :  { %v1721_v61 = vpop.f32.mrb[5].mxu0  ;;  %v1742_v62 = vpop.f32.mrb[4].mxu1 }
 0x13d   :  { %v1722_v63 = vadd.f32 %v1721_v61, %v1720_v60  ;;  %v1723_v0 = vpop.f32.mrb[6].mxu0  ;;  %v1743_v1 = vpop.f32.mrb[5].mxu1 }
 0x13e   :  { %v1724_v2 = vpop.f32.mrb[7].mxu0  ;;  %v1744_v4 = vadd.f32 %v1743_v1, %v1742_v62  ;;  %v1745_v5 = vpop.f32.mrb[6].mxu1 }
 0x13f   :  { %v1296_v3 = vadd.f32 %v1722_v63, %v1256_v59  ;;  %v1746_v6 = vpop.f32.mrb[7].mxu1 }
 0x141   :  { %v1336_v7 = vadd.f32 %v1744_v4, %v1296_v3 }
 0x15b   :  { %v1764_v8 = vpop.f32.mrb[8].mxu0 }
 0x15c   :  { %v1765_v9 = vpop.f32.mrb[9].mxu0  ;;  %v1786_v10 = vpop.f32.mrb[8].mxu1 }
 0x15d   :  { %v1766_v11 = vadd.f32 %v1765_v9, %v1764_v8  ;;  %v1767_v12 = vpop.f32.mrb[10].mxu0  ;;  %v1787_v13 = vpop.f32.mrb[9].mxu1 }
 0x15e   :  { %v1768_v14 = vpop.f32.mrb[11].mxu0  ;;  %v1788_v16 = vadd.f32 %v1787_v13, %v1786_v10  ;;  %v1789_v17 = vpop.f32.mrb[10].mxu1 }
 0x15f   :  { %v1376_v15 = vadd.f32 %v1766_v11, %v1336_v7  ;;  %v1790_v18 = vpop.f32.mrb[11].mxu1 }
 0x161   :  { %v1416_v19 = vadd.f32 %v1788_v16, %v1376_v15 }
 0x17b   :  { %v1808_v20 = vpop.f32.mrb[12].mxu0 }
 0x17c   :  { %v1809_v21 = vpop.f32.mrb[13].mxu0  ;;  %v1830_v22 = vpop.f32.mrb[12].mxu1 }
 0x17d   :  { %v1810_v23 = vadd.f32 %v1809_v21, %v1808_v20  ;;  %v1811_v24 = vpop.f32.mrb[14].mxu0  ;;  %v1831_v25 = vpop.f32.mrb[13].mxu1 }
 0x17e   :  { %v1812_v26 = vpop.f32.mrb[15].mxu0  ;;  %v1832_v28 = vadd.f32 %v1831_v25, %v1830_v22  ;;  %v1833_v29 = vpop.f32.mrb[14].mxu1 }
 0x17f   :  { %v1456_v27 = vadd.f32 %v1810_v23, %v1416_v19  ;;  %v1834_v30 = vpop.f32.mrb[15].mxu1 }
 0x181   :  { %v1496_v31 = vadd.f32 %v1832_v28, %v1456_v27 }
 0x183   :  { %v1502_v32 = vsel %vm1501_vm0, %v1496_v31, -inf }
 0x184   :  { %1503 = vmax.xlane.f32.xlu0 %v1502_v32 }
 0x211   :  { %v1504_v33 = vpop.xlane.xlu0 %1503 }
 0x212   :  { %v1505_v34 = vsub.f32 %v1496_v31, %v1504_v33 }
 0x214   :  { %v1506_v36 = vmul.f32 1.442695, %v1505_v34 }
 0x216   :  { %1974 = vpow2.f32 %v1506_v36 }
 0x220   :  { %v1975_v37 = vpop.eup %1974 }
 0x221   :  { %v1508_v38 = vsel %vm1501_vm0, %v1975_v37, 0.0 }
 0x222   :  { %1509 = vadd.xlane.f32.xlu0 %v1508_v38 }
 0x2af   :  { %v1510_v39 = vpop.xlane.xlu0 %1509 }
 0x2b0   :  { %1976 = vrcp.f32 %v1510_v39 }
 0x2ba   :  { %v1977_v40 = vpop.eup %1976 }
 0x2bb   :  { %v1512_v41 = vmul.f32 %v1977_v40, %v1975_v37 }
 0x2bd   :  { %v1513_v42 = vpack.c.bf16 %v1512_v41, %v1512_v41 }
 0x2bf   :  { %1514 = vst [vmem:[#allocation7] sm:$0x1] %v1513_v42 }
 0x2c0   :  { %2033 = shalt.err (!%p2030_p6)
}
 0x2c1   :  { %s2034_s16 = scalar_lea.hbm %s2135_s3, 16 }
 0x2c2   :  { %p2035_p7 = scmp.ne.s32.totalorder %s2135_s3, %s2034_s16  ;;  %p2038_p8 = scmp.lt.u32.totalorder %s2034_s16, %s2135_s3 }
 0x2c4   :  { %p2040_p9 = pnand %p2038_p8, %p2035_p7 }
 0x2c6   :  { %2043 = shalt.err (!%p2040_p9)
}
 0x2c7   :  { %1524 = dma.vmem_to_hbm [thread:$0]  %s1522_s11, 16, %s2135_s3, [#allocation4]  }
 0x2c8   :  { %2048 = dma.done.wait [#allocation4], 16  }
 0x2c9   :  { %2049 = vsyncadd [#allocation4], 4294967280 }
 0x2ca   :  { %1528 = vsyncpa [#allocation3], 1 }
 0x2cb   :  { %1529 = vsyncpa [#allocation6], 1 }
 0x2cc   :  { %1530 = vsyncpa [#allocation4], 1 }

</bundles_post_ra>
